<compile_context>
chip_gen: v6e
topology: v6e:2x2x1
jax: 0.10.0
libtpu: 0.0.40
codegen_flags: <defaults>
</compile_context>

<pallas_src>
import numpy as np
import jax
import jax.numpy as jnp
from jax.experimental import pallas as pl
from jax.experimental.pallas import tpu as pltpu


def _round_up(x, m):
    return ((x + m - 1) // m) * m


def _inv_kernel(h_ref, hn_ref,
                w1a_ref, w1b_ref, b1_ref,
                w2_ref, b2_ref,
                w3_ref, b3_ref,
                out_ref):
    mm_dt = w1a_ref.dtype                      # matmul operand dtype (f32 or bf16)
    h = h_ref[...].astype(mm_dt)
    hn = hn_ref[...].astype(mm_dt)

    # Layer 1: cat([h, h_next], -1) @ W1 + b1, with W1 split into its two halves.
    x = (jnp.dot(h, w1a_ref[...], preferred_element_type=jnp.float32)
         + jnp.dot(hn, w1b_ref[...], preferred_element_type=jnp.float32)
         + b1_ref[...])
    x = jnp.maximum(x, 0.0)

    # Layer 2: Linear + ReLU
    x = jnp.dot(x.astype(mm_dt), w2_ref[...],
                preferred_element_type=jnp.float32) + b2_ref[...]
    x = jnp.maximum(x, 0.0)

    # Layer 3: output head (lane-padded to a multiple of 128)
    out_ref[...] = jnp.dot(x.astype(mm_dt), w3_ref[...],
                           preferred_element_type=jnp.float32) + b3_ref[...]


def inv_function_forward(h, h_next, params, *, tile_b=256,
                         matmul_dtype=jnp.float32):
    """InvFunction.forward(h, h_next) -> predicted action, shape [B, action_dim]."""
    w1, b1, w2, b2, w3, b3 = params
    B, obs_dim = h.shape
    assert h_next.shape == (B, obs_dim)
    hidden = w1.shape[1]
    act_dim = w3.shape[1]

    # ---- wrapper-side layout plumbing (all static, free) -------------------
    # Split W1 so the kernel never materializes cat([h, h_next]).
    w1a = w1[:obs_dim].astype(matmul_dtype)
    w1b = w1[obs_dim:].astype(matmul_dtype)
    w2c = w2.astype(matmul_dtype)
    # Lane-dense output head: zero-pad W3 / b3 out to a multiple of 128 lanes.
    a_pad = _round_up(act_dim, 128)
    w3p = jnp.zeros((hidden, a_pad), matmul_dtype).at[:, :act_dim].set(
        w3.astype(matmul_dtype))
    b3p = jnp.zeros((1, a_pad), jnp.float32).at[:, :act_dim].set(
        b3.reshape(1, act_dim).astype(jnp.float32))
    b1c = b1.reshape(1, hidden).astype(jnp.float32)
    b2c = b2.reshape(1, hidden).astype(jnp.float32)

    # Batch tiling: sublane-aligned tile; pad B up to a tile multiple.
    tile_b = max(8, min(tile_b, _round_up(B, 8)))
    b_pad = _round_up(B, tile_b)
    if b_pad != B:
        pad = ((0, b_pad - B), (0, 0))
        h = jnp.pad(h, pad)
        h_next = jnp.pad(h_next, pad)
    grid = (b_pad // tile_b,)

    batch_spec = pl.BlockSpec((tile_b, obs_dim), lambda i: (i, 0))

    def resident(shape):
        # Constant index map -> weight/bias stays resident in VMEM across the grid.
        return pl.BlockSpec(shape, lambda i: (0, 0))

    flops = 2 * b_pad * (2 * obs_dim * hidden + hidden * hidden + hidden * a_pad)
    bytes_accessed = int(
        2 * b_pad * obs_dim * 4 + b_pad * a_pad * 4
        + (2 * obs_dim * hidden + hidden * hidden + hidden * a_pad)
        * jnp.dtype(matmul_dtype).itemsize
        + (2 * hidden + a_pad) * 4)

    # NOTE: VMEM use here is tiny; for very large hidden/TILE_B on v7x (64 MiB
    # VMEM) shrink tile_b or set vmem_limit_bytes explicitly.
    out = pl.pallas_call(
        _inv_kernel,
        out_shape=jax.ShapeDtypeStruct((b_pad, a_pad), jnp.float32),
        grid=grid,
        in_specs=[
            batch_spec, batch_spec,
            resident((obs_dim, hidden)), resident((obs_dim, hidden)),
            resident((1, hidden)),
            resident((hidden, hidden)), resident((1, hidden)),
            resident((hidden, a_pad)), resident((1, a_pad)),
        ],
        out_specs=pl.BlockSpec((tile_b, a_pad), lambda i: (i, 0)),
        compiler_params=pltpu.CompilerParams(
            dimension_semantics=("parallel",)),
        cost_estimate=pl.CostEstimate(
            flops=flops, transcendentals=0, bytes_accessed=bytes_accessed),
    )(h, h_next, w1a, w1b, b1c, w2c, b2c, w3p, b3p)

    return out[:B, :act_dim]


def init_params(key, obs_dim, action_dim, hidden_dim):
    """Synthetic init matching nn.Linear shapes (stored as [in, out])."""
    ks = jax.random.split(key, 6)

    def lin(kw, kb, fan_in, fan_out):
        s = 1.0 / np.sqrt(fan_in)
        w = jax.random.uniform(kw, (fan_in, fan_out), jnp.float32, -s, s)
        b = jax.random.uniform(kb, (fan_out,), jnp.float32, -s, s)
        return w, b

    w1, b1 = lin(ks[0], ks[1], 2 * obs_dim, hidden_dim)
    w2, b2 = lin(ks[2], ks[3], hidden_dim, hidden_dim)
    w3, b3 = lin(ks[4], ks[5], hidden_dim, action_dim)
    return (w1, b1, w2, b2, w3, b3)


if __name__ == "__main__":
    obs_dim, hidden_dim, action_dim, batch = 16, 32, 4, 8

    key = jax.random.PRNGKey(0)
    kh, khn, kp = jax.random.split(key, 3)
    h = jax.random.normal(kh, (batch, obs_dim), jnp.float32)
    h_next = jax.random.normal(khn, (batch, obs_dim), jnp.float32)
    params = init_params(kp, obs_dim, action_dim, hidden_dim)

    # f32 matmul path (tight check)
    out = inv_function_forward(h, h_next, params, tile_b=256)
    jax.block_until_ready(out)

    def ref(h, h_next, params):
        w1, b1, w2, b2, w3, b3 = params
        x = jnp.concatenate([h, h_next], axis=-1)
        x = jax.nn.relu(x @ w1 + b1)
        x = jax.nn.relu(x @ w2 + b2)
        return x @ w3 + b3

    r = ref(h, h_next, params)
    np.testing.assert_allclose(np.asarray(out), np.asarray(r),
                               rtol=1e-5, atol=1e-5)

    # bf16 MXU fast path (f32 accumulation) — looser tolerance by construction.
    out_bf16 = inv_function_forward(h, h_next, params, tile_b=256,
                                    matmul_dtype=jnp.bfloat16)
    jax.block_until_ready(out_bf16)
    np.testing.assert_allclose(np.asarray(out_bf16), np.asarray(r),
                               rtol=0.1, atol=0.1)

    print("KERNEL_OK")
</pallas_src>

<mosaic_0001>
module attributes {stable_mosaic.version = 11 : i64} {
  func.func @_inv_kernel(%arg0: i32, %arg1: memref<8x16xf32, #tpu.memory_space<vmem>>, %arg2: memref<8x16xf32, #tpu.memory_space<vmem>>, %arg3: memref<16x32xf32, #tpu.memory_space<vmem>>, %arg4: memref<16x32xf32, #tpu.memory_space<vmem>>, %arg5: memref<1x32xf32, #tpu.memory_space<vmem>>, %arg6: memref<32x32xf32, #tpu.memory_space<vmem>>, %arg7: memref<1x32xf32, #tpu.memory_space<vmem>>, %arg8: memref<32x128xf32, #tpu.memory_space<vmem>>, %arg9: memref<1x128xf32, #tpu.memory_space<vmem>>, %arg10: memref<8x128xf32, #tpu.memory_space<vmem>>) attributes {dimension_semantics = [#tpu.dimension_semantics<parallel>], iteration_bounds = array<i64: 1>, scalar_prefetch = 0 : i64, scratch_operands = 0 : i64, tpu.core_type = #tpu.core_type<tc>, window_params = [{transform_indices = @transform_0, window_bounds = array<i64: 8, 16>}, {transform_indices = @transform_1, window_bounds = array<i64: 8, 16>}, {pipeline_mode = #tpu.pipeline_mode<synchronous>, transform_indices = @transform_2, window_bounds = array<i64: 16, 32>}, {pipeline_mode = #tpu.pipeline_mode<synchronous>, transform_indices = @transform_3, window_bounds = array<i64: 16, 32>}, {pipeline_mode = #tpu.pipeline_mode<synchronous>, transform_indices = @transform_4, window_bounds = array<i64: 1, 32>}, {pipeline_mode = #tpu.pipeline_mode<synchronous>, transform_indices = @transform_5, window_bounds = array<i64: 32, 32>}, {pipeline_mode = #tpu.pipeline_mode<synchronous>, transform_indices = @transform_6, window_bounds = array<i64: 1, 32>}, {pipeline_mode = #tpu.pipeline_mode<synchronous>, transform_indices = @transform_7, window_bounds = array<i64: 32, 128>}, {pipeline_mode = #tpu.pipeline_mode<synchronous>, transform_indices = @transform_8, window_bounds = array<i64: 1, 128>}, {transform_indices = @transform_9, window_bounds = array<i64: 8, 128>}]} {
    %c0 = arith.constant 0 : index
    %c0_0 = arith.constant 0 : index
    %0 = vector.load %arg1[%c0, %c0_0] : memref<8x16xf32, #tpu.memory_space<vmem>>, vector<8x16xf32>
    %c0_1 = arith.constant 0 : index
    %c0_2 = arith.constant 0 : index
    %1 = vector.load %arg2[%c0_1, %c0_2] : memref<8x16xf32, #tpu.memory_space<vmem>>, vector<8x16xf32>
    %c0_3 = arith.constant 0 : index
    %c0_4 = arith.constant 0 : index
    %2 = vector.load %arg3[%c0_3, %c0_4] : memref<16x32xf32, #tpu.memory_space<vmem>>, vector<16x32xf32>
    %cst = arith.constant dense<0.000000e+00> : vector<8x32xf32>
    %3 = tpu.matmul %0, %2, %cst {dimension_numbers = #tpu.dot_dimension_numbers<[1], [0], [0], [1], [0, 0, 1, 1], [], []>} : vector<8x16xf32>, vector<16x32xf32>, vector<8x32xf32> -> vector<8x32xf32>
    %c0_5 = arith.constant 0 : index
    %c0_6 = arith.constant 0 : index
    %4 = vector.load %arg4[%c0_5, %c0_6] : memref<16x32xf32, #tpu.memory_space<vmem>>, vector<16x32xf32>
    %cst_7 = arith.constant dense<0.000000e+00> : vector<8x32xf32>
    %5 = tpu.matmul %1, %4, %cst_7 {dimension_numbers = #tpu.dot_dimension_numbers<[1], [0], [0], [1], [0, 0, 1, 1], [], []>} : vector<8x16xf32>, vector<16x32xf32>, vector<8x32xf32> -> vector<8x32xf32>
    %6 = arith.addf %3, %5 : vector<8x32xf32>
    %c0_8 = arith.constant 0 : index
    %c0_9 = arith.constant 0 : index
    %7 = vector.load %arg5[%c0_8, %c0_9] : memref<1x32xf32, #tpu.memory_space<vmem>>, vector<1x32xf32>
    %8 = vector.broadcast %7 : vector<1x32xf32> to vector<8x32xf32>
    %9 = arith.addf %6, %8 : vector<8x32xf32>
    %cst_10 = arith.constant 0.000000e+00 : f32
    %10 = vector.broadcast %cst_10 : f32 to vector<8x32xf32>
    %11 = arith.maximumf %9, %10 : vector<8x32xf32>
    %c0_11 = arith.constant 0 : index
    %c0_12 = arith.constant 0 : index
    %12 = vector.load %arg6[%c0_11, %c0_12] : memref<32x32xf32, #tpu.memory_space<vmem>>, vector<32x32xf32>
    %cst_13 = arith.constant dense<0.000000e+00> : vector<8x32xf32>
    %13 = tpu.matmul %11, %12, %cst_13 {dimension_numbers = #tpu.dot_dimension_numbers<[1], [0], [0], [1], [0, 0, 1, 1], [], []>} : vector<8x32xf32>, vector<32x32xf32>, vector<8x32xf32> -> vector<8x32xf32>
    %c0_14 = arith.constant 0 : index
    %c0_15 = arith.constant 0 : index
    %14 = vector.load %arg7[%c0_14, %c0_15] : memref<1x32xf32, #tpu.memory_space<vmem>>, vector<1x32xf32>
    %15 = vector.broadcast %14 : vector<1x32xf32> to vector<8x32xf32>
    %16 = arith.addf %13, %15 : vector<8x32xf32>
    %cst_16 = arith.constant 0.000000e+00 : f32
    %17 = vector.broadcast %cst_16 : f32 to vector<8x32xf32>
    %18 = arith.maximumf %16, %17 : vector<8x32xf32>
    %c0_17 = arith.constant 0 : index
    %c0_18 = arith.constant 0 : index
    %19 = vector.load %arg8[%c0_17, %c0_18] : memref<32x128xf32, #tpu.memory_space<vmem>>, vector<32x128xf32>
    %cst_19 = arith.constant dense<0.000000e+00> : vector<8x128xf32>
    %20 = tpu.matmul %18, %19, %cst_19 {dimension_numbers = #tpu.dot_dimension_numbers<[1], [0], [0], [1], [0, 0, 1, 1], [], []>} : vector<8x32xf32>, vector<32x128xf32>, vector<8x128xf32> -> vector<8x128xf32>
    %c0_20 = arith.constant 0 : index
    %c0_21 = arith.constant 0 : index
    %21 = vector.load %arg9[%c0_20, %c0_21] : memref<1x128xf32, #tpu.memory_space<vmem>>, vector<1x128xf32>
    %22 = vector.broadcast %21 : vector<1x128xf32> to vector<8x128xf32>
    %23 = arith.addf %20, %22 : vector<8x128xf32>
    %c0_22 = arith.constant 0 : index
    %c0_23 = arith.constant 0 : index
    %24 = vector.load %arg10[%c0_22, %c0_23] : memref<8x128xf32, #tpu.memory_space<vmem>>, vector<8x128xf32>
    tpu.vector_store %arg10[%c0_22, %c0_23], %23 {strides = array<i32>} : memref<8x128xf32, #tpu.memory_space<vmem>>, vector<8x128xf32>,
    return
  }
  func.func @transform_0(%arg0: i32) -> (i32, i32) {
    %c0_i32 = arith.constant 0 : i32
    %c0_i32_0 = arith.constant 0 : i32
    return %arg0, %c0_i32 : i32, i32
  }
  func.func @transform_1(%arg0: i32) -> (i32, i32) {
    %c0_i32 = arith.constant 0 : i32
    %c0_i32_0 = arith.constant 0 : i32
    return %arg0, %c0_i32 : i32, i32
  }
  func.func @transform_2(%arg0: i32) -> (i32, i32) {
    %c0_i32 = arith.constant 0 : i32
    %c0_i32_0 = arith.constant 0 : i32
    %c0_i32_1 = arith.constant 0 : i32
    return %c0_i32, %c0_i32_0 : i32, i32
  }
  func.func @transform_3(%arg0: i32) -> (i32, i32) {
    %c0_i32 = arith.constant 0 : i32
    %c0_i32_0 = arith.constant 0 : i32
    %c0_i32_1 = arith.constant 0 : i32
    return %c0_i32, %c0_i32_0 : i32, i32
  }
  func.func @transform_4(%arg0: i32) -> (i32, i32) {
    %c0_i32 = arith.constant 0 : i32
    %c0_i32_0 = arith.constant 0 : i32
    %c0_i32_1 = arith.constant 0 : i32
    return %c0_i32, %c0_i32_0 : i32, i32
  }
  func.func @transform_5(%arg0: i32) -> (i32, i32) {
    %c0_i32 = arith.constant 0 : i32
    %c0_i32_0 = arith.constant 0 : i32
    %c0_i32_1 = arith.constant 0 : i32
    return %c0_i32, %c0_i32_0 : i32, i32
  }
  func.func @transform_6(%arg0: i32) -> (i32, i32) {
    %c0_i32 = arith.constant 0 : i32
    %c0_i32_0 = arith.constant 0 : i32
    %c0_i32_1 = arith.constant 0 : i32
    return %c0_i32, %c0_i32_0 : i32, i32
  }
  func.func @transform_7(%arg0: i32) -> (i32, i32) {
    %c0_i32 = arith.constant 0 : i32
    %c0_i32_0 = arith.constant 0 : i32
    %c0_i32_1 = arith.constant 0 : i32
    return %c0_i32, %c0_i32_0 : i32, i32
  }
  func.func @transform_8(%arg0: i32) -> (i32, i32) {
    %c0_i32 = arith.constant 0 : i32
    %c0_i32_0 = arith.constant 0 : i32
    %c0_i32_1 = arith.constant 0 : i32
    return %c0_i32, %c0_i32_0 : i32, i32
  }
  func.func @transform_9(%arg0: i32) -> (i32, i32) {
    %c0_i32 = arith.constant 0 : i32
    %c0_i32_0 = arith.constant 0 : i32
    return %arg0, %c0_i32 : i32, i32
  }
}

</mosaic_0001>

<bundles_post_ra>
// kernel: tpu_custom_call.1
= control target key start
LH: loop header
LB: loop body
LE: loop exit
PB: predicated region body
PF: predicated region fallthrough
CT: control target
= control target key end

     0   :  { %14 = vsyncpa [#allocation3], 0  ;;  %s791_s0 = inlined_call_operand.hbm [shape: f32[8,16], index: 0, kind: input, shape index: {}]   ;;  %s792_s1 = inlined_call_operand.hbm [shape: f32[8,16], index: 1, kind: input, shape index: {}]   ;;  %s793_s2 = inlined_call_operand.hbm [shape: f32[16,32], index: 2, kind: input, shape index: {}]   ;;  %s794_s3 = inlined_call_operand.hbm [shape: f32[16,32], index: 3, kind: input, shape index: {}]   ;;  %s795_s4 = inlined_call_operand.vmem [shape: f32[1,32], index: 4, kind: input, shape index: {}]   ;;  %s796_s5 = inlined_call_operand.hbm [shape: f32[32,32], index: 5, kind: input, shape index: {}]   ;;  %s797_s6 = inlined_call_operand.vmem [shape: f32[1,32], index: 6, kind: input, shape index: {}]   ;;  %s798_s7 = inlined_call_operand.hbm [shape: f32[32,128], index: 7, kind: input, shape index: {}]   ;;  %s799_s8 = inlined_call_operand.vmem [shape: f32[1,128], index: 8, kind: input, shape index: {}]   ;;  %s800_s9 = inlined_call_operand.hbm [shape: f32[8,128], index: 9, kind: output, shape index: {}]  }
   0x1   :  { %15 = vsyncpa [#allocation6], 0 }
   0x2   :  { %16 = vsyncpa [#allocation9], 0 }
   0x3   :  { %17 = vsyncpa [#allocation12], 0 }
   0x4   :  { %18 = vsyncpa [#allocation4], 0  ;;  %s682_s30 = smov [#allocation5]  }
   0x5   :  { %s35_s10 = sshll.u32 %s682_s30, 4  ;;  %s36_s10 = int_to_ptr.vmem [resolvable:$true] %s35_s10 }
   0x6   :  { %s540_s11 = scalar_lea.vmem %s36_s10, 128  ;;  %p545_p1 = scmp.lt.s32.totalorder %s36_s10, %s36_s10 }
   0x7   :  { %p541_p0 = scmp.ne.s32.totalorder %s36_s10, %s540_s11  ;;  %p546_p2 = scmp.lt.s32.totalorder %s540_s11, %s540_s11 }
   0x9   :  { %p547_p3 = por %p546_p2, %p545_p1 }
   0xb   :  { %p548_p4 = pnand %p547_p3, %p541_p0 }
   0xd   :  { %551 = shalt.err (!%p548_p4)
}
   0xe   :  { %38 = dma.hbm_to_vmem [thread:$0]  %s792_s1, 128, %s36_s10, [#allocation6]  }
   0xf   :  { %s683_s14 = smov [#allocation8]   ;;  %s684_s16 = smov [#allocation2]  }
  0x10   :  { %s56_s15 = sshll.u32 %s683_s14, 4  ;;  %s25_s17 = sshll.u32 %s684_s16, 4  ;;  %s57_s15 = int_to_ptr.vmem [resolvable:$true] %s56_s15  ;;  %s26_s17 = int_to_ptr.vmem [resolvable:$true] %s25_s17 }
  0x11   :  { %s560_s18 = scalar_lea.vmem %s57_s15, 256  ;;  %p565_p6 = scmp.lt.s32.totalorder %s57_s15, %s57_s15 }
  0x12   :  { %p561_p5 = scmp.ne.s32.totalorder %s57_s15, %s560_s18  ;;  %p566_p7 = scmp.lt.s32.totalorder %s560_s18, %s560_s18 }
  0x14   :  { %p567_p8 = por %p566_p7, %p565_p6 }
  0x16   :  { %p568_p9 = pnand %p567_p8, %p561_p5 }
  0x18   :  { %571 = shalt.err (!%p568_p9)
}
  0x19   :  { %s685_s19 = smov 128   ;;  %s686_s20 = smov 8  }
  0x1a   :  { %62 = dma.hbm_to_vmem [thread:$0]  %s794_s3, 256, %s57_s15, [#allocation9], %s685_s19, %s685_s19, %s686_s20  }
  0x1b   :  { %s580_s1 = scalar_lea.vmem %s26_s17, 128  ;;  %p585_p11 = scmp.lt.s32.totalorder %s26_s17, %s26_s17 }
  0x1c   :  { %p581_p10 = scmp.ne.s32.totalorder %s26_s17, %s580_s1  ;;  %p586_p12 = scmp.lt.s32.totalorder %s580_s1, %s580_s1 }
  0x1e   :  { %p587_p13 = por %p586_p12, %p585_p11 }
  0x20   :  { %p588_p0 = pnand %p587_p13, %p581_p10 }
  0x22   :  { %591 = shalt.err (!%p588_p0)
}
  0x23   :  { %28 = dma.hbm_to_vmem [thread:$0]  %s791_s0, 128, %s26_s17, [#allocation3]  }
  0x24   :  { %s687_s25 = smov [#allocation7]   ;;  %s688_s27 = smov [#allocation10]  }
  0x25   :  { %s44_s26 = sshll.u32 %s687_s25, 4  ;;  %s70_s28 = sshll.u32 %s688_s27, 4  ;;  %s45_s26 = int_to_ptr.vmem [resolvable:$true] %s44_s26  ;;  %s71_s28 = int_to_ptr.vmem [resolvable:$true] %s70_s28 }
  0x26   :  { %s600_s29 = scalar_lea.vmem %s45_s26, 256  ;;  %p605_p2 = scmp.lt.s32.totalorder %s45_s26, %s45_s26 }
  0x27   :  { %p601_p1 = scmp.ne.s32.totalorder %s45_s26, %s600_s29  ;;  %p606_p3 = scmp.lt.s32.totalorder %s600_s29, %s600_s29 }
  0x29   :  { %p607_p4 = por %p606_p3, %p605_p2 }
  0x2b   :  { %p608_p5 = pnand %p607_p4, %p601_p1 }
  0x2d   :  { %611 = shalt.err (!%p608_p5)
}
  0x2e   :  { %50 = dma.hbm_to_vmem [thread:$0]  %s793_s2, 256, %s45_s26, [#allocation6], %s685_s19, %s685_s19, %s686_s20  }
  0x2f   :  { %s620_s0 = scalar_lea.vmem %s71_s28, 512  ;;  %p625_p7 = scmp.lt.s32.totalorder %s71_s28, %s71_s28 }
  0x30   :  { %p621_p6 = scmp.ne.s32.totalorder %s71_s28, %s620_s0  ;;  %p626_p8 = scmp.lt.s32.totalorder %s620_s0, %s620_s0 }
  0x32   :  { %p627_p9 = por %p626_p8, %p625_p7 }
  0x34   :  { %p628_p10 = pnand %p627_p9, %p621_p6 }
  0x36   :  { %631 = shalt.err (!%p628_p10)
}
  0x37   :  { %76 = dma.hbm_to_vmem [thread:$0]  %s796_s5, 512, %s71_s28, [#allocation9], %s685_s19, %s685_s19, %s686_s20  }
  0x38   :  { %s689_s12 = smov [#allocation11]  }
  0x39   :  { %s84_s13 = sshll.u32 %s689_s12, 4  ;;  %s85_s13 = int_to_ptr.vmem [resolvable:$true] %s84_s13 }
  0x3a   :  { %s640_s14 = scalar_lea.vmem %s85_s13, 512  ;;  %p645_p12 = scmp.lt.s32.totalorder %s85_s13, %s85_s13 }
  0x3b   :  { %p641_p11 = scmp.ne.s32.totalorder %s85_s13, %s640_s14  ;;  %p646_p13 = scmp.lt.s32.totalorder %s640_s14, %s640_s14 }
  0x3d   :  { %p647_p0 = por %p646_p13, %p645_p12 }
  0x3f   :  { %p648_p1 = pnand %p647_p0, %p641_p11 }
  0x41   :  { %651 = shalt.err (!%p648_p1)
}
  0x42   :  { %90 = dma.hbm_to_vmem [thread:$0]  %s798_s7, 512, %s85_s13, [#allocation12], %s685_s19, %s685_s19, %s686_s20  }
  0x43   :  { %672 = dma.done.wait [#allocation3], 128  }
  0x44   :  { %673 = vsyncadd [#allocation3], 4294967168 }
  0x45   :  { %674 = dma.done.wait [#allocation6], 384  }
  0x46   :  { %675 = vsyncadd [#allocation6], 4294966912 }
  0x47   :  { %676 = dma.done.wait [#allocation9], 768  }
  0x48   :  { %677 = vsyncadd [#allocation9], 4294966528 }
  0x49   :  { %678 = dma.done.wait [#allocation12], 512  }
  0x4a   :  { %679 = vsyncadd [#allocation12], 4294966784  ;;  %v690_v0 = vmov 0.0   ;;  %vm691_vm0 = vmmov 0   ;;  %v116_v1 = vld [vmem:[#allocation8 + $0x8] sm:$0xff]  ;;  %v114_v2 = vld [vmem:[#allocation7 + $0x8] sm:$0xff] }
  0x4b   :  { %485 = vmatprep.subr.mxu0 %v690_v0  ;;  %492 = vmatprep.subr.mxu1 %v690_v0  ;;  %v115_v3 = vld [vmem:[#allocation8] sm:$0xff]  ;;  %v113_v4 = vld [vmem:[#allocation7] sm:$0xff]  ;;  %v112_v5 = vld [vmem:[#allocation5] sm:$0xff]  ;;  %vm117_vm1 = vcmask 130048   ;;  %vm284_vm2 = vcmask 261120   ;;  %s692_s19 = smov [#allocation13]  }
  0x4c   :  { %489 = vmatprep.mubr.msk.f32.mxu0 %vm691_vm0, %v690_v0  ;;  %496 = vmatprep.mubr.msk.f32.mxu1 %vm691_vm0, %v690_v0  ;;  %v111_v6 = vld [vmem:[#allocation2] sm:$0xff]  ;;  %v276_v7 = vld [vmem:[#allocation10 + $0x18] sm:$0xff]  ;;  %v274_v9 = vld [vmem:[#allocation10 + $0x8] sm:$0xff]  ;;  %s450_s20 = sshll.u32 %s692_s19, 4  ;;  %s451_s20 = int_to_ptr.vmem [resolvable:$true] %s450_s20 }
  0x4d   :  { %486 = vmatpush3.msra.mxu0 %v116_v1  ;;  %493 = vmatpush3.msra.mxu1 %v114_v2  ;;  %v275_v8 = vld [vmem:[#allocation10 + $0x10] sm:$0xff]  ;;  %v273_v10 = vld [vmem:[#allocation10] sm:$0xff]  ;;  %v362_v11 = vld [vmem:[#allocation11 + $0x18] sm:$0xff]  ;;  %s652_s21 = scalar_lea.vmem %s451_s20, 128  ;;  %p657_p3 = scmp.lt.s32.totalorder %s451_s20, %s451_s20 }
  0x4e   :  { %487 = vmatprep.subr.mxu0 %v690_v0  ;;  %494 = vmatprep.subr.mxu1 %v690_v0  ;;  %v464_v14 = vld [vmem:[%s795_s4] ss:$0 sm:$0xff]  ;;  %v360_v21 = vld [vmem:[#allocation11 + $0x8] sm:$0xff]  ;;  %v359_v22 = vld [vmem:[#allocation11] sm:$0xff]  ;;  %p653_p2 = scmp.ne.s32.totalorder %s451_s20, %s652_s21  ;;  %p658_p4 = scmp.lt.s32.totalorder %s652_s21, %s652_s21 }
  0x4f   :  { %488 = vmatpush3.msra.mxu0 %v115_v3  ;;  %495 = vmatpush3.msra.mxu1 %v113_v4  ;;  %v361_v20 = vld [vmem:[#allocation11 + $0x10] sm:$0xff] }
  0x50   :  { %490 = vmatmul.mubr.msk.f32.vlgmr.msra.gmra.mxu0 %vm117_vm1, %v112_v5  ;;  %497 = vmatmul.mubr.msk.f32.vlgmr.msra.gmra.mxu1 %vm117_vm1, %v111_v6  ;;  %v465_v23 = vld [vmem:[%s797_s6] ss:$0 sm:$0xff]  ;;  %p659_p5 = por %p658_p4, %p657_p3 }
  0x51   :  { %499 = vmatprep.subr.mxu0 %v690_v0  ;;  %507 = vmatprep.mubr.msk.f32.mxu0 %vm691_vm0, %v690_v0  ;;  %v467_v28 = vld [vmem:[%s799_s8] ss:$0 sm:$0xff] }
  0x52   :  { %510 = vmatprep.subr.mxu1 %v690_v0  ;;  %518 = vmatprep.mubr.msk.f32.mxu1 %vm691_vm0, %v690_v0  ;;  %p660_p6 = pnand %p659_p5, %p653_p2 }
  0x53   :  { %500 = vmatpush3.msra.mxu0 %v276_v7  ;;  %511 = vmatpush3.msra.mxu1 %v362_v11 }
  0x54   :  { %501 = vmatprep.subr.mxu0 %v690_v0  ;;  %512 = vmatprep.subr.mxu1 %v690_v0 }
  0x55   :  { %502 = vmatpush3.msra.mxu0 %v275_v8  ;;  %513 = vmatpush3.msra.mxu1 %v361_v20 }
  0x56   :  { %503 = vmatprep.subr.mxu0 %v690_v0  ;;  %514 = vmatprep.subr.mxu1 %v690_v0 }
  0x57   :  { %504 = vmatpush3.msra.mxu0 %v274_v9  ;;  %515 = vmatpush3.msra.mxu1 %v360_v21 }
  0x58   :  { %505 = vmatprep.subr.mxu0 %v690_v0  ;;  %516 = vmatprep.subr.mxu1 %v690_v0 }
  0x59   :  { %506 = vmatpush3.msra.mxu0 %v273_v10  ;;  %517 = vmatpush3.msra.mxu1 %v359_v22 }
 0x110   :  { %v187_v12 = vpop.f32.mrf.mxu0  ;;  %v260_v13 = vpop.f32.mrf.mxu1 }
 0x111   :  { %v261_v15 = vadd.f32 %v260_v13, %v187_v12 }
 0x112   :  { %v491_v16 = vpop.f32.mrf.mxu0  ;;  %v498_v17 = vpop.f32.mrf.mxu1 }
 0x113   :  { %v271_v18 = vadd.f32 %v464_v14, %v261_v15 }
 0x115   :  { %v272_v19 = vmax.f32 %v271_v18, 0.0 }
 0x117   :  { %508 = vmatmul.mubr.msk.f32.vlgmr.msra.gmra.mxu0 %vm284_vm2, %v272_v19 }
 0x1d7   :  { %v354_v24 = vpop.f32.mrf.mxu0 }
 0x1d8   :  { %v355_v25 = vadd.f32 %v465_v23, %v354_v24 }
 0x1d9   :  { %v509_v26 = vpop.f32.mrf.mxu0 }
 0x1da   :  { %v358_v27 = vmax.f32 %v355_v25, 0.0 }
 0x1dc   :  { %519 = vmatmul.mubr.msk.f32.vlgmr.msra.gmra.mxu1 %vm284_vm2, %v358_v27 }
 0x29c   :  { %v439_v29 = vpop.f32.mrf.mxu1 }
 0x29d   :  { %v440_v30 = vadd.f32 %v467_v28, %v439_v29 }
 0x29e   :  { %v520_v31 = vpop.f32.mrf.mxu1 }
 0x29f   :  { %443 = vst [vmem:[#allocation13] sm:$0xff] %v440_v30 }
 0x2a0   :  { %663 = shalt.err (!%p660_p6)
}
 0x2a1   :  { %453 = dma.vmem_to_hbm [thread:$0]  %s451_s20, 128, %s800_s9, [#allocation4]  }
 0x2a2   :  { %680 = dma.done.wait [#allocation4], 128  }
 0x2a3   :  { %681 = vsyncadd [#allocation4], 4294967168 }
 0x2a4   :  { %457 = vsyncpa [#allocation3], 1 }
 0x2a5   :  { %458 = vsyncpa [#allocation6], 1 }
 0x2a6   :  { %459 = vsyncpa [#allocation9], 1 }
 0x2a7   :  { %460 = vsyncpa [#allocation12], 1 }
 0x2a8   :  { %461 = vsyncpa [#allocation4], 1 }

</bundles_post_ra>
